<compile_context>
chip_gen: v7x
topology: tpu7x:2x2x1
jax: 0.10.0
libtpu: 0.0.40
codegen_flags: <defaults>
</compile_context>

<pallas_src>
import functools
import re

import jax
import jax.numpy as jnp
from jax.experimental import pallas as pl
from jax.experimental.pallas import tpu as pltpu


O_PAD = 128  # lane-dense output width (>= real output_dim, multiple of 128)


# --------------------------------------------------------------------------
# Kernel
# --------------------------------------------------------------------------
def deepsets_kernel(x_ref, w1_ref, b1_ref, w2_ref, b2_ref,
                    w3_ref, b3_ref, w4_ref, b4_ref, o_ref,
                    *, n_per_set, inv_n, bf16_silu):
    # x_ref: (TM, D) bf16 tile holding Bt whole batch elements (TM = Bt * N).
    x = x_ref[...]

    def hidden_act(v_f32):
        # SiLU; result is the bf16 operand of the next matmul.
        if bf16_silu:                               # v6e/v7x: bf16 VPU/EUP
            vb = v_f32.astype(jnp.bfloat16)
            return vb * jax.nn.sigmoid(vb)
        return (v_f32 * jax.nn.sigmoid(v_f32)).astype(jnp.bfloat16)  # v5e: f32

    h = hidden_act(jnp.dot(x, w1_ref[...],
                           preferred_element_type=jnp.float32) + b1_ref[...])
    h = hidden_act(jnp.dot(h, w2_ref[...],
                           preferred_element_type=jnp.float32) + b2_ref[...])
    h = jnp.dot(h, w3_ref[...],
                preferred_element_type=jnp.float32) + b3_ref[...]
    h = h * jax.nn.sigmoid(h)                       # f32: feeds the pooled sum

    bt = o_ref.shape[0]
    # Pool BEFORE the (linear) last layer; mean = sum * (1/N), no divide.
    # (With N a multiple of 8 this is a clean cross-sublane reduce.)
    pooled = jnp.sum(h.reshape(bt, n_per_set, h.shape[-1]), axis=1) * inv_n  # (Bt, H) f32

    out = jnp.dot(pooled.astype(jnp.bfloat16), w4_ref[...],
                  preferred_element_type=jnp.float32) + b4_ref[...]          # (Bt, O_PAD)
    o_ref[...] = out.astype(o_ref.dtype)


# --------------------------------------------------------------------------
# Host-side helpers
# --------------------------------------------------------------------------
def _device_kind():
    try:
        return jax.devices()[0].device_kind.lower()
    except Exception:
        return ""


def _choose_bt(batch, n, max_rows_single, target_rows, min_tiles):
    """Batch elements per tile (Bt).

    Single tile when the problem is small (unless >=2 tiles are requested for
    megacore).  Multi-tile Bt is a multiple of 8 (output block alignment) and
    prefers divisors of B so the host never has to zero-pad the batch.
    """
    want_single = batch * n <= max_rows_single
    if want_single and (min_tiles <= 1 or batch < 16):
        return batch                                # grid=(1,)

    rows_cap = target_rows
    if min_tiles > 1:
        rows_cap = min(rows_cap, pl.cdiv(batch, min_tiles) * n)

    bt_cap = max(8, ((rows_cap // max(n, 1)) // 8) * 8)
    bt_cap = min(bt_cap, max(8, (batch // 8) * 8))

    for bt in range(bt_cap, 7, -8):                 # largest /8 divisor of B
        if batch % bt == 0:
            return bt
    return bt_cap                                   # no divisor: pad the batch


def _vmem_estimate_bytes(TM, Bt, D, H):
    x_bytes = 2 * TM * D * 2                        # bf16 x tile, double-buffered
    out_bytes = 2 * Bt * O_PAD * 4                  # f32 out tile, double-buffered
    w_bytes = ((D * H + 2 * H * H + H * O_PAD) * 2 + 4 * (H + O_PAD) * 4) * 2
    act_bytes = 6 * TM * H * 4                      # generous: live f32/bf16 intermediates
    return x_bytes + out_bytes + w_bytes + act_bytes + (8 << 20)


# --------------------------------------------------------------------------
# Public entry point
# --------------------------------------------------------------------------
def deepsets_encoder(x, params, *, max_rows_single=8192, target_rows=4096,
                     min_tiles=None, bf16_silu=None):
    """x: [B, N, D] or [N, D]. Returns [B, output_dim] or [output_dim]."""
    unbatched = (x.ndim == 2)
    if unbatched:
        x = x[None]
    if x.ndim != 3:
        raise ValueError(f"Expected shape (N, D) or (B, N, D), got {x.shape}")

    B, N, D = x.shape
    w1, b1, w2, b2, w3, b3, w4, b4 = params
    H = w1.shape[1]
    O = w4.shape[1]
    assert O <= O_PAD

    kind = _device_kind()
    if bf16_silu is None:                           # bf16 VPU/EUP on v6e/v7x only
        bf16_silu = bool(re.search(r"v[67]", kind))
    if min_tiles is None:                           # 2 TensorCores per chip on v7x
        min_tiles = 2 if "v7" in kind else 1

    # --- lane-dense last layer: zero-pad [H, O] -> [H, O_PAD] ---
    w4p = jnp.zeros((H, O_PAD), jnp.float32).at[:, :O].set(w4)
    b4p = jnp.zeros((1, O_PAD), jnp.float32).at[:, :O].set(b4.reshape(1, O))

    # bf16 MXU operands (f32 accumulation in-kernel); biases stay f32
    w1b = w1.astype(jnp.bfloat16)
    w2b = w2.astype(jnp.bfloat16)
    w3b = w3.astype(jnp.bfloat16)
    w4b = w4p.astype(jnp.bfloat16)
    b1r = b1.reshape(1, H).astype(jnp.float32)
    b2r = b2.reshape(1, H).astype(jnp.float32)
    b3r = b3.reshape(1, H).astype(jnp.float32)
    b4r = b4p

    # --- row-tile selection: whole batch elements per tile ---
    Bt = _choose_bt(B, N, max_rows_single, target_rows, min_tiles)
    B_pad = pl.cdiv(B, Bt) * Bt
    num_tiles = B_pad // Bt
    TM = Bt * N

    xb = x.astype(jnp.bfloat16)
    if B_pad != B:  # rare (only when no /8 divisor of B exists); sliced off below
        xb = jnp.concatenate(
            [xb, jnp.zeros((B_pad - B, N, D), jnp.bfloat16)], axis=0)
    x_flat = xb.reshape(B_pad * N, D)

    # constant index maps -> weights/biases stay resident in VMEM across steps
    resident = lambda a: pl.BlockSpec(a.shape, lambda t: (0, 0))

    kernel = functools.partial(deepsets_kernel, n_per_set=N, inv_n=1.0 / N,
                               bf16_silu=bf16_silu)

    # Explicit VMEM budget only when it would exceed the smallest scoped default.
    vmem_est = _vmem_estimate_bytes(TM, Bt, D, H)
    vmem_limit = int(min(vmem_est, 48 << 20)) if vmem_est > (14 << 20) else None

    out = pl.pallas_call(
        kernel,
        out_shape=jax.ShapeDtypeStruct((B_pad, O_PAD), jnp.float32),
        grid=(num_tiles,),
        in_specs=[
            pl.BlockSpec((TM, D), lambda t: (t, 0)),
            resident(w1b), resident(b1r),
            resident(w2b), resident(b2r),
            resident(w3b), resident(b3r),
            resident(w4b), resident(b4r),
        ],
        out_specs=pl.BlockSpec((Bt, O_PAD), lambda t: (t, 0)),
        compiler_params=pltpu.CompilerParams(
            dimension_semantics=("parallel",),      # shards row tiles across TCs
            vmem_limit_bytes=vmem_limit),
    )(x_flat, w1b, b1r, w2b, b2r, w3b, b3r, w4b, b4r)

    out = out[:B, :O]
    if unbatched:
        out = out[0]
    return out


# --------------------------------------------------------------------------
# Init + pure-JAX reference + self-test
# --------------------------------------------------------------------------
def init_params(key, input_dim=6, hidden_dim=64, output_dim=32):
    """Deterministic init mimicking torch.nn.Linear (uniform +/- 1/sqrt(fan_in)).
    Weights are stored [in, out] (transpose of torch.nn.Linear.weight)."""
    dims = [(input_dim, hidden_dim), (hidden_dim, hidden_dim),
            (hidden_dim, hidden_dim), (hidden_dim, output_dim)]
    params = []
    for (fan_in, fan_out) in dims:
        key, kw, kb = jax.random.split(key, 3)
        bound = 1.0 / jnp.sqrt(fan_in)
        w = jax.random.uniform(kw, (fan_in, fan_out), jnp.float32, -bound, bound)
        b = jax.random.uniform(kb, (fan_out,), jnp.float32, -bound, bound)
        params += [w, b]
    return tuple(params)


def deepsets_encoder_ref(x, params):
    """Pure-JAX (f32) reference for correctness checking."""
    w1, b1, w2, b2, w3, b3, w4, b4 = params
    unbatched = (x.ndim == 2)
    if unbatched:
        x = x[None]
    h = jax.nn.silu(x @ w1 + b1)
    h = jax.nn.silu(h @ w2 + b2)
    h = jax.nn.silu(h @ w3 + b3)
    h = h @ w4 + b4
    out = h.mean(axis=1)
    return out[0] if unbatched else out


if __name__ == "__main__":
    key = jax.random.PRNGKey(0)
    k_params, k_x, k_xbig = jax.random.split(key, 3)

    input_dim, hidden_dim, output_dim = 6, 64, 32
    B, N = 2, 8

    params = init_params(k_params, input_dim, hidden_dim, output_dim)
    x = jax.random.normal(k_x, (B, N, input_dim), dtype=jnp.float32)

    # bf16 MXU operands -> tolerance relaxed vs the f32 reference
    ATOL = RTOL = 5e-2

    # batched path (single-tile grid on 1-TC chips)
    out = deepsets_encoder(x, params)
    out = jax.block_until_ready(out)
    ref = deepsets_encoder_ref(x, params)
    assert out.shape == (B, output_dim), out.shape
    assert jnp.allclose(out, ref, atol=ATOL, rtol=RTOL), "batched mismatch"

    # unbatched path [N, D] -> [output_dim]
    out2 = deepsets_encoder(x[0], params)
    out2 = jax.block_until_ready(out2)
    ref2 = deepsets_encoder_ref(x[0], params)
    assert out2.shape == (output_dim,), out2.shape
    assert jnp.allclose(out2, ref2, atol=ATOL, rtol=RTOL), "unbatched mismatch"

    # multi-tile path (forced small tile limit so several grid steps run;
    # Bt=8 divides B=24 so no host-side padding is needed)
    Bb = 24
    xbig = jax.random.normal(k_xbig, (Bb, N, input_dim), dtype=jnp.float32)
    out3 = deepsets_encoder(xbig, params, max_rows_single=64, target_rows=64)
    out3 = jax.block_until_ready(out3)
    ref3 = deepsets_encoder_ref(xbig, params)
    assert out3.shape == (Bb, output_dim), out3.shape
    assert jnp.allclose(out3, ref3, atol=ATOL, rtol=RTOL), "multi-tile mismatch"

    print("KERNEL_OK")
</pallas_src>

<mosaic_0001>
module attributes {stable_mosaic.version = 11 : i64} {
  func.func @deepsets_kernel(%arg0: i32, %arg1: memref<16x6xbf16, #tpu.memory_space<vmem>>, %arg2: memref<6x64xbf16, #tpu.memory_space<vmem>>, %arg3: memref<1x64xf32, #tpu.memory_space<vmem>>, %arg4: memref<64x64xbf16, #tpu.memory_space<vmem>>, %arg5: memref<1x64xf32, #tpu.memory_space<vmem>>, %arg6: memref<64x64xbf16, #tpu.memory_space<vmem>>, %arg7: memref<1x64xf32, #tpu.memory_space<vmem>>, %arg8: memref<64x128xbf16, #tpu.memory_space<vmem>>, %arg9: memref<1x128xf32, #tpu.memory_space<vmem>>, %arg10: memref<2x128xf32, #tpu.memory_space<vmem>>) attributes {dimension_semantics = [#tpu.dimension_semantics<parallel>], iteration_bounds = array<i64: 1>, scalar_prefetch = 0 : i64, scratch_operands = 0 : i64, tpu.core_type = #tpu.core_type<tc>, window_params = [{transform_indices = @transform_0, window_bounds = array<i64: 16, 6>}, {pipeline_mode = #tpu.pipeline_mode<synchronous>, transform_indices = @transform_1, window_bounds = array<i64: 6, 64>}, {pipeline_mode = #tpu.pipeline_mode<synchronous>, transform_indices = @transform_2, window_bounds = array<i64: 1, 64>}, {pipeline_mode = #tpu.pipeline_mode<synchronous>, transform_indices = @transform_3, window_bounds = array<i64: 64, 64>}, {pipeline_mode = #tpu.pipeline_mode<synchronous>, transform_indices = @transform_4, window_bounds = array<i64: 1, 64>}, {pipeline_mode = #tpu.pipeline_mode<synchronous>, transform_indices = @transform_5, window_bounds = array<i64: 64, 64>}, {pipeline_mode = #tpu.pipeline_mode<synchronous>, transform_indices = @transform_6, window_bounds = array<i64: 1, 64>}, {pipeline_mode = #tpu.pipeline_mode<synchronous>, transform_indices = @transform_7, window_bounds = array<i64: 64, 128>}, {pipeline_mode = #tpu.pipeline_mode<synchronous>, transform_indices = @transform_8, window_bounds = array<i64: 1, 128>}, {transform_indices = @transform_9, window_bounds = array<i64: 2, 128>}]} {
    %c0 = arith.constant 0 : index
    %c0_0 = arith.constant 0 : index
    %0 = vector.load %arg1[%c0, %c0_0] : memref<16x6xbf16, #tpu.memory_space<vmem>>, vector<16x6xbf16>
    %c0_1 = arith.constant 0 : index
    %c0_2 = arith.constant 0 : index
    %1 = vector.load %arg2[%c0_1, %c0_2] : memref<6x64xbf16, #tpu.memory_space<vmem>>, vector<6x64xbf16>
    %cst = arith.constant dense<0.000000e+00> : vector<16x64xf32>
    %2 = tpu.matmul %0, %1, %cst {dimension_numbers = #tpu.dot_dimension_numbers<[1], [0], [0], [1], [0, 0, 1, 1], [], []>} : vector<16x6xbf16>, vector<6x64xbf16>, vector<16x64xf32> -> vector<16x64xf32>
    %c0_3 = arith.constant 0 : index
    %c0_4 = arith.constant 0 : index
    %3 = vector.load %arg3[%c0_3, %c0_4] : memref<1x64xf32, #tpu.memory_space<vmem>>, vector<1x64xf32>
    %4 = vector.broadcast %3 : vector<1x64xf32> to vector<16x64xf32>
    %5 = arith.addf %2, %4 : vector<16x64xf32>
    %6 = arith.negf %5 : vector<16x64xf32>
    %7 = math.exp %6 : vector<16x64xf32>
    %cst_5 = arith.constant 1.000000e+00 : f32
    %8 = vector.broadcast %cst_5 : f32 to vector<16x64xf32>
    %9 = arith.addf %8, %7 : vector<16x64xf32>
    %10 = arith.divf %8, %9 : vector<16x64xf32>
    %11 = arith.mulf %5, %10 : vector<16x64xf32>
    %12 = arith.truncf %11 : vector<16x64xf32> to vector<16x64xbf16>
    %c0_6 = arith.constant 0 : index
    %c0_7 = arith.constant 0 : index
    %13 = vector.load %arg4[%c0_6, %c0_7] : memref<64x64xbf16, #tpu.memory_space<vmem>>, vector<64x64xbf16>
    %cst_8 = arith.constant dense<0.000000e+00> : vector<16x64xf32>
    %14 = tpu.matmul %12, %13, %cst_8 {dimension_numbers = #tpu.dot_dimension_numbers<[1], [0], [0], [1], [0, 0, 1, 1], [], []>} : vector<16x64xbf16>, vector<64x64xbf16>, vector<16x64xf32> -> vector<16x64xf32>
    %c0_9 = arith.constant 0 : index
    %c0_10 = arith.constant 0 : index
    %15 = vector.load %arg5[%c0_9, %c0_10] : memref<1x64xf32, #tpu.memory_space<vmem>>, vector<1x64xf32>
    %16 = vector.broadcast %15 : vector<1x64xf32> to vector<16x64xf32>
    %17 = arith.addf %14, %16 : vector<16x64xf32>
    %18 = arith.negf %17 : vector<16x64xf32>
    %19 = math.exp %18 : vector<16x64xf32>
    %cst_11 = arith.constant 1.000000e+00 : f32
    %20 = vector.broadcast %cst_11 : f32 to vector<16x64xf32>
    %21 = arith.addf %20, %19 : vector<16x64xf32>
    %22 = arith.divf %20, %21 : vector<16x64xf32>
    %23 = arith.mulf %17, %22 : vector<16x64xf32>
    %24 = arith.truncf %23 : vector<16x64xf32> to vector<16x64xbf16>
    %c0_12 = arith.constant 0 : index
    %c0_13 = arith.constant 0 : index
    %25 = vector.load %arg6[%c0_12, %c0_13] : memref<64x64xbf16, #tpu.memory_space<vmem>>, vector<64x64xbf16>
    %cst_14 = arith.constant dense<0.000000e+00> : vector<16x64xf32>
    %26 = tpu.matmul %24, %25, %cst_14 {dimension_numbers = #tpu.dot_dimension_numbers<[1], [0], [0], [1], [0, 0, 1, 1], [], []>} : vector<16x64xbf16>, vector<64x64xbf16>, vector<16x64xf32> -> vector<16x64xf32>
    %c0_15 = arith.constant 0 : index
    %c0_16 = arith.constant 0 : index
    %27 = vector.load %arg7[%c0_15, %c0_16] : memref<1x64xf32, #tpu.memory_space<vmem>>, vector<1x64xf32>
    %28 = vector.broadcast %27 : vector<1x64xf32> to vector<16x64xf32>
    %29 = arith.addf %26, %28 : vector<16x64xf32>
    %30 = arith.negf %29 : vector<16x64xf32>
    %31 = math.exp %30 : vector<16x64xf32>
    %cst_17 = arith.constant 1.000000e+00 : f32
    %32 = vector.broadcast %cst_17 : f32 to vector<16x64xf32>
    %33 = arith.addf %32, %31 : vector<16x64xf32>
    %34 = arith.divf %32, %33 : vector<16x64xf32>
    %35 = arith.mulf %29, %34 : vector<16x64xf32>
    %36 = vector.shape_cast %35 : vector<16x64xf32> to vector<2x8x64xf32>
    %cst_18 = arith.constant dense<0.000000e+00> : vector<2x64xf32>
    %37 = vector.multi_reduction <add>, %36, %cst_18 [1] : vector<2x8x64xf32> to vector<2x64xf32>
    %cst_19 = arith.constant 1.250000e-01 : f32
    %38 = vector.broadcast %cst_19 : f32 to vector<2x64xf32>
    %39 = arith.mulf %37, %38 : vector<2x64xf32>
    %40 = arith.truncf %39 : vector<2x64xf32> to vector<2x64xbf16>
    %c0_20 = arith.constant 0 : index
    %c0_21 = arith.constant 0 : index
    %41 = vector.load %arg8[%c0_20, %c0_21] : memref<64x128xbf16, #tpu.memory_space<vmem>>, vector<64x128xbf16>
    %cst_22 = arith.constant dense<0.000000e+00> : vector<2x128xf32>
    %42 = tpu.matmul %40, %41, %cst_22 {dimension_numbers = #tpu.dot_dimension_numbers<[1], [0], [0], [1], [0, 0, 1, 1], [], []>} : vector<2x64xbf16>, vector<64x128xbf16>, vector<2x128xf32> -> vector<2x128xf32>
    %c0_23 = arith.constant 0 : index
    %c0_24 = arith.constant 0 : index
    %43 = vector.load %arg9[%c0_23, %c0_24] : memref<1x128xf32, #tpu.memory_space<vmem>>, vector<1x128xf32>
    %44 = vector.broadcast %43 : vector<1x128xf32> to vector<2x128xf32>
    %45 = arith.addf %42, %44 : vector<2x128xf32>
    %c0_25 = arith.constant 0 : index
    %c0_26 = arith.constant 0 : index
    %46 = vector.load %arg10[%c0_25, %c0_26] : memref<2x128xf32, #tpu.memory_space<vmem>>, vector<2x128xf32>
    tpu.vector_store %arg10[%c0_25, %c0_26], %45 {strides = array<i32>} : memref<2x128xf32, #tpu.memory_space<vmem>>, vector<2x128xf32>,
    return
  }
  func.func @transform_0(%arg0: i32) -> (i32, i32) {
    %c0_i32 = arith.constant 0 : i32
    %c0_i32_0 = arith.constant 0 : i32
    return %arg0, %c0_i32 : i32, i32
  }
  func.func @transform_1(%arg0: i32) -> (i32, i32) {
    %c0_i32 = arith.constant 0 : i32
    %c0_i32_0 = arith.constant 0 : i32
    %c0_i32_1 = arith.constant 0 : i32
    return %c0_i32, %c0_i32_0 : i32, i32
  }
  func.func @transform_2(%arg0: i32) -> (i32, i32) {
    %c0_i32 = arith.constant 0 : i32
    %c0_i32_0 = arith.constant 0 : i32
    %c0_i32_1 = arith.constant 0 : i32
    return %c0_i32, %c0_i32_0 : i32, i32
  }
  func.func @transform_3(%arg0: i32) -> (i32, i32) {
    %c0_i32 = arith.constant 0 : i32
    %c0_i32_0 = arith.constant 0 : i32
    %c0_i32_1 = arith.constant 0 : i32
    return %c0_i32, %c0_i32_0 : i32, i32
  }
  func.func @transform_4(%arg0: i32) -> (i32, i32) {
    %c0_i32 = arith.constant 0 : i32
    %c0_i32_0 = arith.constant 0 : i32
    %c0_i32_1 = arith.constant 0 : i32
    return %c0_i32, %c0_i32_0 : i32, i32
  }
  func.func @transform_5(%arg0: i32) -> (i32, i32) {
    %c0_i32 = arith.constant 0 : i32
    %c0_i32_0 = arith.constant 0 : i32
    %c0_i32_1 = arith.constant 0 : i32
    return %c0_i32, %c0_i32_0 : i32, i32
  }
  func.func @transform_6(%arg0: i32) -> (i32, i32) {
    %c0_i32 = arith.constant 0 : i32
    %c0_i32_0 = arith.constant 0 : i32
    %c0_i32_1 = arith.constant 0 : i32
    return %c0_i32, %c0_i32_0 : i32, i32
  }
  func.func @transform_7(%arg0: i32) -> (i32, i32) {
    %c0_i32 = arith.constant 0 : i32
    %c0_i32_0 = arith.constant 0 : i32
    %c0_i32_1 = arith.constant 0 : i32
    return %c0_i32, %c0_i32_0 : i32, i32
  }
  func.func @transform_8(%arg0: i32) -> (i32, i32) {
    %c0_i32 = arith.constant 0 : i32
    %c0_i32_0 = arith.constant 0 : i32
    %c0_i32_1 = arith.constant 0 : i32
    return %c0_i32, %c0_i32_0 : i32, i32
  }
  func.func @transform_9(%arg0: i32) -> (i32, i32) {
    %c0_i32 = arith.constant 0 : i32
    %c0_i32_0 = arith.constant 0 : i32
    return %arg0, %c0_i32 : i32, i32
  }
}

</mosaic_0001>

<bundles_post_ra>
// kernel: tpu_custom_call.1
= control target key start
LH: loop header
LB: loop body
LE: loop exit
PB: predicated region body
PF: predicated region fallthrough
CT: control target
= control target key end

     0   :  { %14 = vsyncpa [#allocation3], 0  ;;  %s863_s0 = inlined_call_operand.vmem [shape: bf16[16,6], index: 0, kind: input, shape index: {}]   ;;  %s864_s1 = inlined_call_operand.vmem [shape: bf16[6,64], index: 1, kind: input, shape index: {}]   ;;  %s865_s2 = inlined_call_operand.vmem [shape: f32[1,64], index: 2, kind: input, shape index: {}]   ;;  %s866_s3 = inlined_call_operand.hbm [shape: bf16[64,64], index: 3, kind: input, shape index: {}]   ;;  %s867_s4 = inlined_call_operand.vmem [shape: f32[1,64], index: 4, kind: input, shape index: {}]   ;;  %s868_s5 = inlined_call_operand.hbm [shape: bf16[64,64], index: 5, kind: input, shape index: {}]   ;;  %s869_s6 = inlined_call_operand.hbm [shape: f32[1,64], index: 6, kind: input, shape index: {}]   ;;  %s870_s7 = inlined_call_operand.vmem [shape: bf16[64,128], index: 7, kind: input, shape index: {}]   ;;  %s871_s8 = inlined_call_operand.vmem [shape: f32[1,128], index: 8, kind: input, shape index: {}]   ;;  %s872_s9 = inlined_call_operand.hbm [shape: f32[2,128], index: 9, kind: output, shape index: {}]  }
   0x1   :  { %15 = vsyncpa [#allocation6], 0 }
   0x2   :  { %16 = vsyncpa [#allocation4], 0  ;;  %s697_s30 = smov [#allocation5]   ;;  %s698_s11 = smov [#allocation2]  }
   0x3   :  { %s42_s10 = sshll.u32 %s697_s30, 4  ;;  %s28_s12 = sshll.u32 %s698_s11, 4  ;;  %s43_s10 = int_to_ptr.vmem [resolvable:$true] %s42_s10  ;;  %s755_s12 = int_to_ptr.vmem [resolvable:$true] %s28_s12 }
   0x4   :  { %s603_s15 = scalar_lea.hbm %s868_s5, 512 }
   0x5   :  { %p604_p0 = scmp.ne.s32.totalorder %s868_s5, %s603_s15  ;;  %p607_p1 = scmp.lt.u32.totalorder %s603_s15, %s868_s5 }
   0x7   :  { %p609_p2 = pnand %p607_p1, %p604_p0 }
   0x9   :  { %612 = shalt.err (!%p609_p2)
}
   0xa   :  { %s613_s20 = scalar_lea.vmem %s43_s10, 512  ;;  %p618_p4 = scmp.lt.s32.totalorder %s43_s10, %s43_s10 }
   0xb   :  { %p614_p3 = scmp.ne.s32.totalorder %s43_s10, %s613_s20  ;;  %p619_p5 = scmp.lt.s32.totalorder %s613_s20, %s613_s20 }
   0xd   :  { %p620_p6 = por %p619_p5, %p618_p4 }
   0xf   :  { %p621_p7 = pnand %p620_p6, %p614_p3 }
  0x11   :  { %624 = shalt.err (!%p621_p7)
}
  0x12   :  { %s699_s21 = smov 64   ;;  %s700_s22 = smov 4  }
  0x13   :  { %48 = dma.hbm_to_vmem [thread:$0]  %s868_s5, 512, %s43_s10, [#allocation6], %s699_s21, %s699_s21, %s700_s22  }
  0x14   :  { %s625_s27 = scalar_lea.hbm %s866_s3, 512 }
  0x15   :  { %p626_p8 = scmp.ne.s32.totalorder %s866_s3, %s625_s27  ;;  %p629_p9 = scmp.lt.u32.totalorder %s625_s27, %s866_s3 }
  0x17   :  { %p631_p10 = pnand %p629_p9, %p626_p8 }
  0x19   :  { %634 = shalt.err (!%p631_p10)
}
  0x1a   :  { %s635_s13 = scalar_lea.vmem %s755_s12, 512  ;;  %p640_p12 = scmp.lt.s32.totalorder %s755_s12, %s755_s12 }
  0x1b   :  { %p636_p11 = scmp.ne.s32.totalorder %s755_s12, %s635_s13  ;;  %p641_p13 = scmp.lt.s32.totalorder %s635_s13, %s635_s13 }
  0x1d   :  { %p642_p0 = por %p641_p13, %p640_p12 }
  0x1f   :  { %p643_p1 = pnand %p642_p0, %p636_p11 }
  0x21   :  { %646 = shalt.err (!%p643_p1)
}
  0x22   :  { %34 = dma.hbm_to_vmem [thread:$0]  %s866_s3, 512, %s755_s12, [#allocation3], %s699_s21, %s699_s21, %s700_s22  }
  0x23   :  { %s701_s14 = smov [#allocation7]   ;;  %s647_s18 = scalar_lea.hbm %s869_s6, 16 }
  0x24   :  { %s55_s15 = sshll.u32 %s701_s14, 4  ;;  %p648_p2 = scmp.ne.s32.totalorder %s869_s6, %s647_s18  ;;  %s56_s15 = int_to_ptr.vmem [resolvable:$true] %s55_s15 }
  0x25   :  { %p651_p3 = scmp.lt.u32.totalorder %s647_s18, %s869_s6 }
  0x27   :  { %p653_p4 = pnand %p651_p3, %p648_p2 }
  0x29   :  { %656 = shalt.err (!%p653_p4)
}
  0x2a   :  { %s657_s25 = scalar_lea.vmem %s56_s15, 16  ;;  %s661_s3 = scalar_lea.vmem %s56_s15, 32 }
  0x2b   :  { %p658_p5 = scmp.ne.s32.totalorder %s56_s15, %s657_s25  ;;  %p662_p6 = scmp.lt.s32.totalorder %s56_s15, %s56_s15 }
  0x2c   :  { %p663_p7 = scmp.lt.s32.totalorder %s661_s3, %s657_s25 }
  0x2e   :  { %p664_p8 = por %p663_p7, %p662_p6 }
  0x30   :  { %p665_p9 = pnand %p664_p8, %p658_p5 }
  0x32   :  { %668 = shalt.err (!%p665_p9)
}
  0x33   :  { %58 = dma.hbm_to_vmem [thread:$0]  %s869_s6, 16, %s56_s15, [#allocation6]  }
  0x34   :  { %691 = dma.done.wait [#allocation3], 512  }
  0x35   :  { %692 = vsyncadd [#allocation3], 4294966784 }
  0x36   :  { %693 = dma.done.wait [#allocation6], 528  }
  0x37   :  { %694 = vsyncadd [#allocation6], 4294966768  ;;  %v702_v0 = vmov 0.0   ;;  %vm703_vm0 = vmmov 0   ;;  %vm92_vm1 = vcmask 1042432   ;;  %v566_v3 = vld [vmem:[%s863_s0] sm:$0xff]  }
  0x38   :  { %516 = vmatprep.subr.bf16.mxu0 %v702_v0  ;;  %518 = vmatprep.mubr.msk.bf16.mxu0 %vm703_vm0, %v702_v0  ;;  %v75_v1 = vld [vmem:[%s864_s1] sm:$0x7]  ;;  %vm88_vm2 = vcmask 48128   ;;  %v567_v4 = vld [vmem:[#allocation2] sm:$0xff]   ;;  %v568_v5 = vld [vmem:[#allocation2 + $0x8] sm:$0xff]   ;;  %vm191_vm3 = vcmask 523264  }
  0x39   :  { %522 = vmatprep.subr.bf16.mxu1 %v702_v0  ;;  %530 = vmatprep.mubr.msk.bf16.mxu1 %vm703_vm0, %v702_v0  ;;  %v94_v2 = vsel %vm92_vm1, %v75_v1, 0  ;;  %v569_v6 = vld [vmem:[#allocation2 + $0x10] sm:$0xff]   ;;  %v570_v7 = vld [vmem:[#allocation2 + $0x18] sm:$0xff]   ;;  %v571_v26 = vld [vmem:[#allocation5] sm:$0xff]   ;;  %vm385_vm4 = vcmask 1041409   ;;  %s704_s16 = smov [#allocation8]  }
  0x3a   :  { %517 = vmatpush3.bf16.msra.mxu0 %v94_v2  ;;  %523 = vmatpush3.bf16.msra.mxu1 %v567_v4  ;;  %v472_v8 = vld [vmem:[%s865_s2] ss:$0 sm:$0xff]  ;;  %v572_v27 = vld [vmem:[#allocation5 + $0x8] sm:$0xff]   ;;  %v573_v28 = vld [vmem:[#allocation5 + $0x10] sm:$0xff]   ;;  %s462_s17 = sshll.u32 %s704_s16, 4  ;;  %s463_s17 = int_to_ptr.vmem [resolvable:$true] %s462_s17 }
  0x3b   :  { %534 = vmatprep.subr.bf16.mxu0 %v702_v0  ;;  %524 = vmatprep.subr.bf16.mxu1 %v702_v0  ;;  %v574_v29 = vld [vmem:[#allocation5 + $0x18] sm:$0xff]   ;;  %v576_v49 = vld [vmem:[%s870_s7 + $0x8] sm:$0xff]   ;;  %v577_v50 = vld [vmem:[%s870_s7 + $0x10] sm:$0xff]   ;;  %s669_s18 = scalar_lea.vmem %s463_s17, 32  ;;  %p674_p11 = scmp.lt.s32.totalorder %s463_s17, %s463_s17 }
  0x3c   :  { %v477_v30 = vld [vmem:[%s867_s4] ss:$0 sm:$0xff]  ;;  %v578_v51 = vld [vmem:[%s870_s7 + $0x18] sm:$0xff]   ;;  %v485_v52 = vld [vmem:[#allocation7] ss:$0 sm:$0xff]  ;;  %p670_p10 = scmp.ne.s32.totalorder %s463_s17, %s669_s18  ;;  %p675_p12 = scmp.lt.s32.totalorder %s669_s18, %s669_s18 }
  0x3d   :  { %519 = vmatmul.mubr.msk.bf16.vlgmr.msra.gmra.mrb[0].mxu0 %vm88_vm2, %v566_v3  ;;  %v575_v48 = vld [vmem:[%s870_s7] sm:$0xff]  }
  0x3e   :  { %542 = vmatprep.mubr.msk.bf16.mxu0 %vm703_vm0, %v702_v0  ;;  %525 = vmatpush3.bf16.msra.mxu1 %v568_v5  ;;  %p676_p13 = por %p675_p12, %p674_p11 }
  0x3f   :  { %526 = vmatprep.subr.bf16.mxu1 %v702_v0  ;;  %535 = vmatpush3.bf16.msra.mxu0 %v571_v26 }
  0x40   :  { %536 = vmatprep.subr.bf16.mxu0 %v702_v0  ;;  %p677_p0 = pnand %p676_p13, %p670_p10 }
  0x42   :  { %527 = vmatpush3.bf16.msra.mxu1 %v569_v6 }
  0x43   :  { %528 = vmatprep.subr.bf16.mxu1 %v702_v0  ;;  %537 = vmatpush3.bf16.msra.mxu0 %v572_v27  ;;  %v493_v27 = vld [vmem:[%s871_s8] ss:$0 sm:$0xff] }
  0x44   :  { %538 = vmatprep.subr.bf16.mxu0 %v702_v0 }
  0x46   :  { %529 = vmatpush3.bf16.msra.mxu1 %v570_v7 }
  0x47   :  { %546 = vmatprep.subr.bf16.mxu1 %v702_v0  ;;  %539 = vmatpush3.bf16.msra.mxu0 %v573_v28 }
  0x48   :  { %540 = vmatprep.subr.bf16.mxu0 %v702_v0 }
  0x4b   :  { %541 = vmatpush3.bf16.msra.mxu0 %v574_v29 }
 0x110   :  { %v130_v9 = vpop.f32.mrb[0].mxu0 }
 0x111   :  { %v131_v10 = vadd.f32 %v472_v8, %v130_v9  ;;  %v520_v11 = vpop.f32.mrb[1].mxu0 }
 0x112   :  { %v133_v12 = vpop.f32.mrb[2].mxu0 }
 0x113   :  { %v475_v13 = vmul.f32 -1.442695, %v131_v10  ;;  %v134_v14 = vadd.f32 %v472_v8, %v133_v12  ;;  %v521_v15 = vpop.f32.mrb[3].mxu0 }
 0x115   :  { %579 = vpow2.f32 %v475_v13  ;;  %v476_v16 = vmul.f32 -1.442695, %v134_v14 }
 0x117   :  { %581 = vpow2.f32 %v476_v16 }
 0x11f   :  { %v580_v17 = vpop.eup %579 }
 0x120   :  { %v143_v18 = vadd.f32 1.0, %v580_v17 }
 0x121   :  { %v582_v19 = vpop.eup %581 }
 0x122   :  { %583 = vrcp.f32 %v143_v18  ;;  %v144_v20 = vadd.f32 1.0, %v582_v19 }
 0x124   :  { %585 = vrcp.f32 %v144_v20 }
 0x12c   :  { %v584_v21 = vpop.eup %583 }
 0x12d   :  { %v149_v23 = vmul.f32 %v584_v21, %v131_v10 }
 0x12e   :  { %v586_v22 = vpop.eup %585 }
 0x12f   :  { %v150_v24 = vmul.f32 %v586_v22, %v134_v14 }
 0x131   :  { %v151_v25 = vpack.c.bf16 %v150_v24, %v149_v23 }
 0x133   :  { %531 = vmatmul.mubr.msk.bf16.vlgmr.msra.gmra.mrb[0].mxu1 %vm191_vm3, %v151_v25 }
 0x134   :  { %554 = vmatprep.mubr.msk.bf16.mxu1 %vm703_vm0, %v702_v0  ;;  %547 = vmatpush3.bf16.msra.mxu1 %v575_v48 }
 0x135   :  { %548 = vmatprep.subr.bf16.mxu1 %v702_v0 }
 0x138   :  { %549 = vmatpush3.bf16.msra.mxu1 %v576_v49 }
 0x139   :  { %550 = vmatprep.subr.bf16.mxu1 %v702_v0 }
 0x13c   :  { %551 = vmatpush3.bf16.msra.mxu1 %v577_v50 }
 0x13d   :  { %552 = vmatprep.subr.bf16.mxu1 %v702_v0 }
 0x140   :  { %553 = vmatpush3.bf16.msra.mxu1 %v578_v51 }
 0x206   :  { %v229_v31 = vpop.f32.mrb[0].mxu1 }
 0x207   :  { %v230_v32 = vadd.f32 %v477_v30, %v229_v31  ;;  %v532_v33 = vpop.f32.mrb[1].mxu1 }
 0x208   :  { %v232_v34 = vpop.f32.mrb[2].mxu1 }
 0x209   :  { %v483_v35 = vmul.f32 -1.442695, %v230_v32  ;;  %v233_v36 = vadd.f32 %v477_v30, %v232_v34  ;;  %v533_v37 = vpop.f32.mrb[3].mxu1 }
 0x20b   :  { %587 = vpow2.f32 %v483_v35  ;;  %v484_v38 = vmul.f32 -1.442695, %v233_v36 }
 0x20d   :  { %589 = vpow2.f32 %v484_v38 }
 0x215   :  { %v588_v39 = vpop.eup %587 }
 0x216   :  { %v242_v40 = vadd.f32 1.0, %v588_v39 }
 0x217   :  { %v590_v41 = vpop.eup %589 }
 0x218   :  { %591 = vrcp.f32 %v242_v40  ;;  %v243_v42 = vadd.f32 1.0, %v590_v41 }
 0x21a   :  { %593 = vrcp.f32 %v243_v42 }
 0x222   :  { %v592_v43 = vpop.eup %591 }
 0x223   :  { %v248_v45 = vmul.f32 %v592_v43, %v230_v32 }
 0x224   :  { %v594_v44 = vpop.eup %593 }
 0x225   :  { %v249_v46 = vmul.f32 %v594_v44, %v233_v36 }
 0x227   :  { %v250_v47 = vpack.c.bf16 %v249_v46, %v248_v45 }
 0x229   :  { %543 = vmatmul.mubr.msk.bf16.vlgmr.msra.gmra.mrb[4].mxu0 %vm191_vm3, %v250_v47 }
 0x2fc   :  { %v327_v53 = vpop.f32.mrb[4].mxu0 }
 0x2fd   :  { %v328_v54 = vadd.f32 %v485_v52, %v327_v53  ;;  %v544_v55 = vpop.f32.mrb[5].mxu0 }
 0x2fe   :  { %v330_v56 = vpop.f32.mrb[6].mxu0 }
 0x2ff   :  { %v491_v57 = vmul.f32 -1.442695, %v328_v54  ;;  %v331_v58 = vadd.f32 %v485_v52, %v330_v56  ;;  %v545_v59 = vpop.f32.mrb[7].mxu0 }
 0x301   :  { %595 = vpow2.f32 %v491_v57  ;;  %v492_v60 = vmul.f32 -1.442695, %v331_v58 }
 0x303   :  { %597 = vpow2.f32 %v492_v60 }
 0x30b   :  { %v596_v61 = vpop.eup %595 }
 0x30c   :  { %v340_v62 = vadd.f32 1.0, %v596_v61 }
 0x30d   :  { %v598_v63 = vpop.eup %597 }
 0x30e   :  { %599 = vrcp.f32 %v340_v62  ;;  %v341_v0 = vadd.f32 1.0, %v598_v63 }
 0x310   :  { %601 = vrcp.f32 %v341_v0 }
 0x318   :  { %v600_v1 = vpop.eup %599 }
 0x319   :  { %v346_v2 = vmul.f32 %v600_v1, %v328_v54 }
 0x31a   :  { %v602_v3 = vpop.eup %601 }
 0x31b   :  { %v348_v4 = vsel %vm191_vm3, %v346_v2, 0.0  ;;  %v347_v5 = vmul.f32 %v602_v3, %v331_v58 }
 0x31c   :  { %v349_v6 = vrot.slane %v348_v4, 4 }
 0x31d   :  { %v355_v7 = vsel %vm191_vm3, %v347_v5, 0.0 }
 0x31e   :  { %v350_v8 = vadd.f32 %v349_v6, %v348_v4  ;;  %v356_v9 = vrot.slane %v355_v7, 4 }
 0x320   :  { %v351_v10 = vrot.slane %v350_v8, 2  ;;  %v357_v11 = vadd.f32 %v356_v9, %v355_v7 }
 0x322   :  { %v352_v12 = vadd.f32 %v351_v10, %v350_v8  ;;  %v358_v13 = vrot.slane %v357_v11, 2 }
 0x324   :  { %v353_v14 = vrot.slane %v352_v12, 1  ;;  %v359_v15 = vadd.f32 %v358_v13, %v357_v11 }
 0x326   :  { %v354_v16 = vadd.f32 %v353_v14, %v352_v12  ;;  %v360_v17 = vrot.slane %v359_v15, 1 }
 0x328   :  { %v362_v18 = vmul.f32 0.125, %v354_v16  ;;  %v361_v19 = vadd.f32 %v360_v17, %v359_v15 }
 0x32a   :  { %v364_v20 = vpack.c.bf16 %v362_v18, %v362_v18  ;;  %v363_v21 = vmul.f32 0.125, %v361_v19 }
 0x32c   :  { %v365_v22 = vpack.c.bf16 %v363_v21, %v363_v21  ;;  %v383_v23 = vunpack.c.l.b16 %v364_v20 }
 0x32e   :  { %v384_v24 = vunpack.c.l.b16 %v365_v22 }
 0x330   :  { %v386_v25 = vsel %vm385_vm4, %v384_v24, %v383_v23 }
 0x331   :  { %v387_v26 = vpack.c.b16 %v386_v25, %v386_v25 }
 0x333   :  { %555 = vmatmul.mubr.msk.bf16.vlgmr.msra.gmra.mrb[4].mxu1 %vm191_vm3, %v387_v26 }
 0x406   :  { %v449_v28 = vpop.f32.mrb[4].mxu1 }
 0x407   :  { %v450_v29 = vadd.f32 %v493_v27, %v449_v28  ;;  %v556_v30 = vpop.f32.mrb[5].mxu1 }
 0x408   :  { %v452_v31 = vpop.f32.mrb[6].mxu1 }
 0x409   :  { %455 = vst [vmem:[#allocation8] sm:$0x3] %v450_v29  ;;  %v557_v32 = vpop.f32.mrb[7].mxu1 }
 0x40a   :  { %680 = shalt.err (!%p677_p0)
}
 0x40b   :  { %s681_s8 = scalar_lea.hbm %s872_s9, 32 }
 0x40c   :  { %p682_p1 = scmp.ne.s32.totalorder %s872_s9, %s681_s8  ;;  %p685_p2 = scmp.lt.u32.totalorder %s681_s8, %s872_s9 }
 0x40e   :  { %p687_p3 = pnand %p685_p2, %p682_p1 }
 0x410   :  { %690 = shalt.err (!%p687_p3)
}
 0x411   :  { %465 = dma.vmem_to_hbm [thread:$0]  %s463_s17, 32, %s872_s9, [#allocation4]  }
 0x412   :  { %695 = dma.done.wait [#allocation4], 32  }
 0x413   :  { %696 = vsyncadd [#allocation4], 4294967264 }
 0x414   :  { %469 = vsyncpa [#allocation3], 1 }
 0x415   :  { %470 = vsyncpa [#allocation6], 1 }
 0x416   :  { %471 = vsyncpa [#allocation4], 1 }

</bundles_post_ra>
